<compile_context>
chip_gen: v7x
topology: tpu7x:2x2x1
jax: 0.10.0
libtpu: 0.0.40
codegen_flags: <defaults>
</compile_context>

<pallas_src>
import math

import jax
import jax.numpy as jnp
from jax.experimental import pallas as pl
from jax.experimental.pallas import tpu as pltpu


def _round_up(x, m):
    return ((x + m - 1) // m) * m


def _actor_kernel(obj_ref, ems_ref, bias_ref, w_ref, out_ref):
    TB, Nb, Fo = obj_ref.shape
    _, Ne, Fe = ems_ref.shape
    H = w_ref.shape[1]

    # One shared weight slab; static slices are free (8-row aligned sections).
    w = w_ref[...]                                   # (Fo + Fe + H, H)
    w_obj = w[0:Fo, :]                               # [W_box; W_prec; b_box; 0]
    w_ems = w[Fo:Fo + Fe, :]                         # [W_ems; b_ems; 0]
    w_qk = w[Fo + Fe:Fo + Fe + H, :]                 # (W_q @ W_k.T) / sqrt(H)

    # ObjectEncoder: bias folded in (ones column x bias row), batch flattened
    # into the sublane (M) dim of the MXU.
    obj2 = obj_ref[...].reshape(TB * Nb, Fo)
    box_h = jnp.maximum(
        jnp.dot(obj2, w_obj, preferred_element_type=jnp.float32), 0.0)

    # SpaceEncoder: same bias fold.
    ems2 = ems_ref[...].reshape(TB * Ne, Fe)
    ems_h = jnp.maximum(
        jnp.dot(ems2, w_ems, preferred_element_type=jnp.float32), 0.0)

    # Pointer attention with pre-folded W_q @ W_k.T / sqrt(H).
    q = jnp.dot(ems_h, w_qk, preferred_element_type=jnp.float32)
    q3 = q.reshape(TB, Ne, H)
    k3 = box_h.reshape(TB, Nb, H)
    scores = jnp.einsum("beh,bnh->ben", q3, k3,
                        preferred_element_type=jnp.float32)      # (TB, Ne, Nb)

    # Single precomputed additive bias: masks + clamped log(valid * access).
    logits = scores + bias_ref[...]

    # Softmax over the flattened (Ne * Nb) positions, per batch element.
    m = jnp.max(jnp.max(logits, axis=2, keepdims=True), axis=1, keepdims=True)
    p = jnp.exp(logits - m)
    s = jnp.sum(jnp.sum(p, axis=2, keepdims=True), axis=1, keepdims=True)
    # Exact divide: one scalar per batch element, cost unmeasurable, and the
    # probabilities sum to 1 to f32 precision (approx reciprocal removed).
    out_ref[...] = (p / s).astype(out_ref.dtype)


def prepare_actor_params(params):
    """Constant pre-folds, done ONCE outside the per-call hot path."""
    f32 = jnp.float32
    H = params["W_q"].shape[0]
    box_dim = params["W_box"].shape[0]
    prec_dim = params["W_prec"].shape[0]
    ems_dim = params["W_ems"].shape[0]

    fo_p = _round_up(box_dim + prec_dim + 1, 8)      # obj features + bias col, padded
    fe_p = _round_up(ems_dim + 1, 8)                 # ems features + bias col, padded

    w_obj = jnp.zeros((fo_p, H), f32)
    w_obj = w_obj.at[:box_dim].set(params["W_box"].astype(f32))
    w_obj = w_obj.at[box_dim:box_dim + prec_dim].set(params["W_prec"].astype(f32))
    w_obj = w_obj.at[box_dim + prec_dim].set(params["b_box"].reshape(H).astype(f32))

    w_ems = jnp.zeros((fe_p, H), f32)
    w_ems = w_ems.at[:ems_dim].set(params["W_ems"].astype(f32))
    w_ems = w_ems.at[ems_dim].set(params["b_ems"].reshape(H).astype(f32))

    # Exact algebraic fold: q @ W_q @ (k @ W_k).T / sqrt(H) == q @ W_qk @ k.T
    w_qk = (params["W_q"].astype(f32) @ params["W_k"].astype(f32).T) \
        * f32(1.0 / math.sqrt(H))

    w_all = jnp.concatenate([w_obj, w_ems, w_qk], axis=0)        # (fo_p+fe_p+H, H)
    return {"W_all": w_all, "fo_p": int(fo_p), "fe_p": int(fe_p), "H": int(H),
            "box_dim": int(box_dim), "prec_dim": int(prec_dim),
            "ems_dim": int(ems_dim)}


def _default_tb(B):
    """Generation-aware batch block: split across v7x's two TCs, single step otherwise."""
    try:
        kind = jax.devices()[0].device_kind.lower()
    except Exception:
        return B
    if "v7" in kind and B % 2 == 0 and B >= 2:
        return B // 2
    return B


def actor_forward(prep, box, prec, ems, ems_mask, e2b_mask,
                  valid_mask, access_mask, *, tb=None):
    f32 = jnp.float32
    B, Nb, box_dim = box.shape
    _, Ne, ems_dim = ems.shape
    prec_dim = prec.shape[-1]
    fo_p, fe_p, H = prep["fo_p"], prep["fe_p"], prep["H"]
    w_all = prep["W_all"]

    if tb is None:
        tb = _default_tb(B)
    assert B % tb == 0
    steps = B // tb

    # ---- per-call (data-dependent) prep; runs fused under jax.jit ----
    # Ones column folds the biases into the matmuls; zero-pad to the padded
    # feature widths so kernel slab slices stay 8-row aligned.
    obj_in = jnp.concatenate(
        [box.astype(f32), prec.astype(f32), jnp.ones((B, Nb, 1), f32),
         jnp.zeros((B, Nb, fo_p - (box_dim + prec_dim + 1)), f32)], axis=-1)
    ems_in = jnp.concatenate(
        [ems.astype(f32), jnp.ones((B, Ne, 1), f32),
         jnp.zeros((B, Ne, fe_p - (ems_dim + 1)), f32)], axis=-1)

    # Combined additive bias: fused masks + Net's log(valid * access) term,
    # clamped to a finite -1e9 so a fully-masked row can never produce NaN.
    neg = f32(-1e9)
    va = valid_mask.astype(f32) * access_mask.astype(f32)
    log_va = jnp.where(va > 0, jnp.log(jnp.maximum(va, f32(1e-30))), neg)
    mask_bias = jnp.where(
        (ems_mask[:, :, None].astype(f32) * e2b_mask.astype(f32)) > 0,
        f32(0.0), neg)
    bias = mask_bias + log_va[:, None, :]                         # (B, Ne, Nb)

    def batched(shape):
        nd = len(shape)
        return pl.BlockSpec((tb,) + tuple(shape[1:]),
                            lambda i, nd=nd: (i,) + (0,) * (nd - 1))

    in_specs = [
        batched(obj_in.shape),                       # [box | prec | 1 | 0]
        batched(ems_in.shape),                       # [ems | 1 | 0]
        batched(bias.shape),                         # combined additive bias
        pl.BlockSpec(w_all.shape, lambda i: (0, 0)), # single shared weight slab
    ]

    # VMEM budget check: double-buffered batched streams + slab + output.
    per_step_bytes = (2 * tb * (Nb * fo_p + Ne * fe_p + 2 * Ne * Nb) * 4
                      + 2 * int(w_all.size) * 4)
    cp_kwargs = {"dimension_semantics": ("parallel",)}
    if per_step_bytes > 24 * 1024 * 1024:
        # Stay under v7x's 64 MiB physical VMEM with headroom.
        cp_kwargs["vmem_limit_bytes"] = min(int(per_step_bytes * 2),
                                            56 * 1024 * 1024)

    out = pl.pallas_call(
        _actor_kernel,
        out_shape=jax.ShapeDtypeStruct((B, Ne, Nb), f32),
        grid=(steps,),
        in_specs=in_specs,
        out_specs=pl.BlockSpec((tb, Ne, Nb), lambda i: (i, 0, 0)),
        compiler_params=pltpu.CompilerParams(**cp_kwargs),
    )(obj_in, ems_in, bias, w_all)

    probs = out.reshape(B, Ne * Nb)
    return probs, None


def _reference_forward(params, box, prec, ems, ems_mask, e2b_mask,
                       valid_mask, access_mask):
    """Pure-JAX reference (un-folded weights) mirroring the kernel semantics."""
    H = params["W_q"].shape[0]
    box_h = jnp.maximum(box @ params["W_box"] + prec @ params["W_prec"]
                        + params["b_box"], 0.0)
    ems_h = jnp.maximum(ems @ params["W_ems"] + params["b_ems"], 0.0)
    q = ems_h @ params["W_q"]
    k = box_h @ params["W_k"]
    scores = jnp.einsum("beh,bnh->ben", q, k) / math.sqrt(H)
    neg = jnp.float32(-1e9)
    scores = scores + jnp.where((ems_mask[:, :, None] * e2b_mask) > 0, 0.0, neg)
    logits = scores + jnp.log(valid_mask * access_mask)[:, None, :]
    B = box.shape[0]
    return jax.nn.softmax(logits.reshape(B, -1), axis=1)


def _xavier(key, shape):
    limit = math.sqrt(6.0 / (shape[0] + shape[1]))
    return jax.random.uniform(key, shape, jnp.float32, -limit, limit)


if __name__ == "__main__":
    # Small shapes consistent with the module: batch=2, N_box=8, N_ems=8,
    # box_dim=6, ems_dim=6, prec_dim=8, hidden_dim=32, corner_num=1.
    B, Nb, Ne = 2, 8, 8
    box_dim, ems_dim, prec_dim, H = 6, 6, 8, 32

    key = jax.random.PRNGKey(0)
    keys = jax.random.split(key, 10)

    params = {
        "W_box": _xavier(keys[0], (box_dim, H)),
        "W_prec": _xavier(keys[1], (prec_dim, H)),
        "b_box": jnp.zeros((1, H), jnp.float32),
        "W_ems": _xavier(keys[2], (ems_dim, H)),
        "b_ems": jnp.zeros((1, H), jnp.float32),
        "W_q": _xavier(keys[3], (H, H)),
        "W_k": _xavier(keys[4], (H, H)),
    }

    box = jax.random.uniform(keys[5], (B, Nb, box_dim), jnp.float32)
    prec = jax.random.uniform(keys[6], (B, Nb, prec_dim), jnp.float32)
    ems = jax.random.uniform(keys[7], (B, Ne, ems_dim), jnp.float32)

    ems_mask = jnp.ones((B, Ne), jnp.float32).at[0, Ne - 1].set(0.0)
    e2b_mask = jnp.ones((B, Ne, Nb), jnp.float32).at[1, 0, Nb - 1].set(0.0)
    valid_mask = jnp.ones((B, Nb), jnp.float32).at[1, Nb - 1].set(0.0)
    access_mask = jnp.ones((B, Nb), jnp.float32).at[0, 0].set(0.0)

    # Constant weight pre-folds happen once, outside the per-call hot path.
    prep = prepare_actor_params(params)

    fwd = jax.jit(lambda b, p, e, em, eb, vm, am:
                  actor_forward(prep, b, p, e, em, eb, vm, am))
    probs, state = fwd(box, prec, ems, ems_mask, e2b_mask, valid_mask,
                       access_mask)
    probs = jax.block_until_ready(probs)

    ref = _reference_forward(params, box, prec, ems, ems_mask, e2b_mask,
                             valid_mask, access_mask)
    assert probs.shape == (B, Ne * Nb)
    assert bool(jnp.all(jnp.isfinite(probs)))
    assert jnp.allclose(jnp.sum(probs, axis=1), 1.0, atol=1e-3)
    assert jnp.allclose(probs, ref, rtol=2e-3, atol=1e-6)

    print("KERNEL_OK")
</pallas_src>

<mosaic_0001>
module attributes {stable_mosaic.version = 11 : i64} {
  func.func @_actor_kernel(%arg0: i32, %arg1: memref<2x8x16xf32, #tpu.memory_space<vmem>>, %arg2: memref<2x8x8xf32, #tpu.memory_space<vmem>>, %arg3: memref<2x8x8xf32, #tpu.memory_space<vmem>>, %arg4: memref<56x32xf32, #tpu.memory_space<vmem>>, %arg5: memref<2x8x8xf32, #tpu.memory_space<vmem>>) attributes {dimension_semantics = [#tpu.dimension_semantics<parallel>], iteration_bounds = array<i64: 1>, scalar_prefetch = 0 : i64, scratch_operands = 0 : i64, tpu.core_type = #tpu.core_type<tc>, window_params = [{transform_indices = @transform_0, window_bounds = array<i64: 2, 8, 16>}, {transform_indices = @transform_1, window_bounds = array<i64: 2, 8, 8>}, {transform_indices = @transform_2, window_bounds = array<i64: 2, 8, 8>}, {pipeline_mode = #tpu.pipeline_mode<synchronous>, transform_indices = @transform_3, window_bounds = array<i64: 56, 32>}, {transform_indices = @transform_4, window_bounds = array<i64: 2, 8, 8>}]} {
    %c0 = arith.constant 0 : index
    %c0_0 = arith.constant 0 : index
    %0 = vector.load %arg4[%c0, %c0_0] : memref<56x32xf32, #tpu.memory_space<vmem>>, vector<56x32xf32>
    %1 = vector.extract_strided_slice %0 {offsets = [0, 0], sizes = [16, 32], strides = [1, 1]} : vector<56x32xf32> to vector<16x32xf32>
    %2 = vector.extract_strided_slice %0 {offsets = [16, 0], sizes = [8, 32], strides = [1, 1]} : vector<56x32xf32> to vector<8x32xf32>
    %3 = vector.extract_strided_slice %0 {offsets = [24, 0], sizes = [32, 32], strides = [1, 1]} : vector<56x32xf32> to vector<32x32xf32>
    %c0_1 = arith.constant 0 : index
    %c0_2 = arith.constant 0 : index
    %c0_3 = arith.constant 0 : index
    %4 = vector.load %arg1[%c0_1, %c0_2, %c0_3] : memref<2x8x16xf32, #tpu.memory_space<vmem>>, vector<2x8x16xf32>
    %5 = vector.shape_cast %4 : vector<2x8x16xf32> to vector<16x16xf32>
    %cst = arith.constant dense<0.000000e+00> : vector<16x32xf32>
    %6 = tpu.matmul %5, %1, %cst {dimension_numbers = #tpu.dot_dimension_numbers<[1], [0], [0], [1], [0, 0, 1, 1], [], []>} : vector<16x16xf32>, vector<16x32xf32>, vector<16x32xf32> -> vector<16x32xf32>
    %cst_4 = arith.constant 0.000000e+00 : f32
    %7 = vector.broadcast %cst_4 : f32 to vector<16x32xf32>
    %8 = arith.maximumf %6, %7 : vector<16x32xf32>
    %c0_5 = arith.constant 0 : index
    %c0_6 = arith.constant 0 : index
    %c0_7 = arith.constant 0 : index
    %9 = vector.load %arg2[%c0_5, %c0_6, %c0_7] : memref<2x8x8xf32, #tpu.memory_space<vmem>>, vector<2x8x8xf32>
    %10 = vector.shape_cast %9 : vector<2x8x8xf32> to vector<16x8xf32>
    %cst_8 = arith.constant dense<0.000000e+00> : vector<16x32xf32>
    %11 = tpu.matmul %10, %2, %cst_8 {dimension_numbers = #tpu.dot_dimension_numbers<[1], [0], [0], [1], [0, 0, 1, 1], [], []>} : vector<16x8xf32>, vector<8x32xf32>, vector<16x32xf32> -> vector<16x32xf32>
    %cst_9 = arith.constant 0.000000e+00 : f32
    %12 = vector.broadcast %cst_9 : f32 to vector<16x32xf32>
    %13 = arith.maximumf %11, %12 : vector<16x32xf32>
    %cst_10 = arith.constant dense<0.000000e+00> : vector<16x32xf32>
    %14 = tpu.matmul %13, %3, %cst_10 {dimension_numbers = #tpu.dot_dimension_numbers<[1], [0], [0], [1], [0, 0, 1, 1], [], []>} : vector<16x32xf32>, vector<32x32xf32>, vector<16x32xf32> -> vector<16x32xf32>
    %15 = vector.shape_cast %14 : vector<16x32xf32> to vector<2x8x32xf32>
    %16 = vector.shape_cast %8 : vector<16x32xf32> to vector<2x8x32xf32>
    "tpu.trace_start"() <{level = 10 : i32, message = "beh,bnh->ben"}> : () -> ()
    %cst_11 = arith.constant dense<0.000000e+00> : vector<2x8x8xf32>
    %17 = tpu.matmul %15, %16, %cst_11 {dimension_numbers = #tpu.dot_dimension_numbers<[2], [2], [1], [1], [0, 0, 0, 1, 1, 1], [0], [0]>} : vector<2x8x32xf32>, vector<2x8x32xf32>, vector<2x8x8xf32> -> vector<2x8x8xf32>
    "tpu.trace_stop"() : () -> ()
    %c0_12 = arith.constant 0 : index
    %c0_13 = arith.constant 0 : index
    %c0_14 = arith.constant 0 : index
    %18 = vector.load %arg3[%c0_12, %c0_13, %c0_14] : memref<2x8x8xf32, #tpu.memory_space<vmem>>, vector<2x8x8xf32>
    %19 = arith.addf %17, %18 : vector<2x8x8xf32>
    %cst_15 = arith.constant dense<0xFF800000> : vector<2x8xf32>
    %20 = vector.multi_reduction <maximumf>, %19, %cst_15 [2] : vector<2x8x8xf32> to vector<2x8xf32>
    %21 = vector.shape_cast %20 : vector<2x8xf32> to vector<2x8x1xf32>
    %cst_16 = arith.constant dense<0xFF800000> : vector<2x1xf32>
    %22 = vector.multi_reduction <maximumf>, %21, %cst_16 [1] : vector<2x8x1xf32> to vector<2x1xf32>
    %23 = vector.shape_cast %22 : vector<2x1xf32> to vector<2x1x1xf32>
    %24 = vector.broadcast %23 : vector<2x1x1xf32> to vector<2x8x8xf32>
    %25 = arith.subf %19, %24 : vector<2x8x8xf32>
    %26 = math.exp %25 : vector<2x8x8xf32>
    %cst_17 = arith.constant dense<0.000000e+00> : vector<2x8xf32>
    %27 = vector.multi_reduction <add>, %26, %cst_17 [2] : vector<2x8x8xf32> to vector<2x8xf32>
    %28 = vector.shape_cast %27 : vector<2x8xf32> to vector<2x8x1xf32>
    %cst_18 = arith.constant dense<0.000000e+00> : vector<2x1xf32>
    %29 = vector.multi_reduction <add>, %28, %cst_18 [1] : vector<2x8x1xf32> to vector<2x1xf32>
    %30 = vector.shape_cast %29 : vector<2x1xf32> to vector<2x1x1xf32>
    %31 = vector.broadcast %30 : vector<2x1x1xf32> to vector<2x8x8xf32>
    %32 = arith.divf %26, %31 : vector<2x8x8xf32>
    %c0_19 = arith.constant 0 : index
    %c0_20 = arith.constant 0 : index
    %c0_21 = arith.constant 0 : index
    %33 = vector.load %arg5[%c0_19, %c0_20, %c0_21] : memref<2x8x8xf32, #tpu.memory_space<vmem>>, vector<2x8x8xf32>
    tpu.vector_store %arg5[%c0_19, %c0_20, %c0_21], %32 {strides = array<i32>} : memref<2x8x8xf32, #tpu.memory_space<vmem>>, vector<2x8x8xf32>,
    return
  }
  func.func @transform_0(%arg0: i32) -> (i32, i32, i32) {
    %c0_i32 = arith.constant 0 : i32
    %c0_i32_0 = arith.constant 0 : i32
    %c0_i32_1 = arith.constant 0 : i32
    return %arg0, %c0_i32, %c0_i32_0 : i32, i32, i32
  }
  func.func @transform_1(%arg0: i32) -> (i32, i32, i32) {
    %c0_i32 = arith.constant 0 : i32
    %c0_i32_0 = arith.constant 0 : i32
    %c0_i32_1 = arith.constant 0 : i32
    return %arg0, %c0_i32, %c0_i32_0 : i32, i32, i32
  }
  func.func @transform_2(%arg0: i32) -> (i32, i32, i32) {
    %c0_i32 = arith.constant 0 : i32
    %c0_i32_0 = arith.constant 0 : i32
    %c0_i32_1 = arith.constant 0 : i32
    return %arg0, %c0_i32, %c0_i32_0 : i32, i32, i32
  }
  func.func @transform_3(%arg0: i32) -> (i32, i32) {
    %c0_i32 = arith.constant 0 : i32
    %c0_i32_0 = arith.constant 0 : i32
    %c0_i32_1 = arith.constant 0 : i32
    return %c0_i32, %c0_i32_0 : i32, i32
  }
  func.func @transform_4(%arg0: i32) -> (i32, i32, i32) {
    %c0_i32 = arith.constant 0 : i32
    %c0_i32_0 = arith.constant 0 : i32
    %c0_i32_1 = arith.constant 0 : i32
    return %arg0, %c0_i32, %c0_i32_0 : i32, i32, i32
  }
}

</mosaic_0001>

<bundles_post_ra>
// kernel: _lambda_.1
= control target key start
LH: loop header
LB: loop body
LE: loop exit
PB: predicated region body
PF: predicated region fallthrough
CT: control target
= control target key end

     0   :  { %vm112_vm0 = vcmask 64512   ;;  %vm26_vm1 = vcmask 130048   ;;  %v566_v14 = vmov 0.0   ;;  %vm196_vm2 = vcmask 261120   ;;  %s654_s3 = inlined_call_operand.vmem [shape: f32[56,32], index: 3, kind: input, shape index: {}]   ;;  %s655_s1 = inlined_call_operand.vmem [shape: f32[2,8,8], index: 1, kind: input, shape index: {}]   ;;  %s656_s0 = inlined_call_operand.vmem [shape: f32[2,8,16], index: 0, kind: input, shape index: {}]   ;;  %s657_s2 = inlined_call_operand.vmem [shape: f32[2,8,8], index: 2, kind: input, shape index: {}]   ;;  %s658_s4 = inlined_call_operand.vmem [shape: f32[2,8,8], index: 4, kind: output, shape index: {}]  }
   0x1   :  { %v19_v0 = vld [vmem:[%s654_s3 + $0x10] sm:$0xff]  ;;  %v110_v1 = vld [vmem:[%s655_s1] sm:$0xff]  ;;  %v111_v2 = vld [vmem:[%s655_s1 + $0x8] sm:$0xff]  ;;  %vm567_vm3 = vmmov 0  }
   0x2   :  { %518 = vmatprep.subr.mxu1 %v19_v0  ;;  %520 = vmatprep.mubr.msk.f32.mxu1 %vm112_vm0, %v110_v1  ;;  %v17_v3 = vld [vmem:[%s654_s3] sm:$0xff]  ;;  %v18_v4 = vld [vmem:[%s654_s3 + $0x8] sm:$0xff]  ;;  %v20_v7 = vld [vmem:[%s654_s3 + $0x18] sm:$0xff] }
   0x3   :  { %v24_v5 = vld [vmem:[%s656_s0] sm:$0xff]  ;;  %519 = vmatpush3.msra.mxu1 %v19_v0  ;;  %v544_v6 = vpack.c.bf16 %v18_v4, %v17_v3  ;;  %v25_v10 = vld [vmem:[%s656_s0 + $0x8] sm:$0xff]  ;;  %v23_v12 = vld [vmem:[%s654_s3 + $0x30] sm:$0xff] }
   0x4   :  { %515 = vmatprep.mubr.msk.f32.mxu0 %vm26_vm1, %v24_v5  ;;  %v21_v8 = vld [vmem:[%s654_s3 + $0x20] sm:$0xff]  ;;  %521 = vmatmul.mubr.msk.f32.vlgmr.msra.gmra.mrb[0].mxu1 %vm112_vm0, %v111_v2  ;;  %v22_v11 = vld [vmem:[%s654_s3 + $0x28] sm:$0xff] }
   0x5   :  { %v548_v9 = vpack.c.bf16 %v21_v8, %v20_v7  ;;  %545 = vmatprep.subr.bf16.mxu0 %v544_v6  ;;  %v552_v13 = vpack.c.bf16 %v23_v12, %v22_v11  ;;  %v278_v25 = vld [vmem:[%s657_s2] sm:$0xff]  ;;  %v279_v29 = vld [vmem:[%s657_s2 + $0x8] sm:$0xff] }
   0x6   :  { %547 = vmatpush3.bf16.msra.mxu0 %v544_v6 }
   0x7   :  { %549 = vmatprep.subr.bf16.mxu1 %v548_v9  ;;  %534 = vmatprep.subr.mxu0 %v566_v14 }
   0x8   :  { %551 = vmatpush3.bf16.msra.mxu1 %v548_v9 }
   0x9   :  { %516 = vmatmul.mubr.msk.f32.vlgmr.msra.gmra.mrb[0].mxu0 %vm26_vm1, %v25_v10  ;;  %553 = vmatprep.subr.bf16.mxu1 %v552_v13 }
   0xa   :  { %536 = vmatprep.mubr.msk.f32.mxu0 %vm567_vm3, %v566_v14 }
   0xc   :  { %555 = vmatpush3.bf16.msra.mxu1 %v552_v13 }
  0xd7   :  { %v522_v15 = vpop.f32.mrb[0].mxu1 }
  0xd8   :  { %v185_v16 = vpop.f32.mrb[1].mxu1  ;;  %v195_v18 = vmax.f32 %v522_v15, 0.0 }
  0xd9   :  { %v194_v17 = vmax.f32 %v185_v16, 0.0 }
  0xdb   :  { %531 = vmatprep.mubr.msk.f32.mxu1 %vm196_vm2, %v194_v17 }
  0xdc   :  { %532 = vmatmul.mubr.msk.f32.vlgmr.msra.gmra.mrb[2].mxu1 %vm196_vm2, %v195_v18  ;;  %v517_v19 = vpop.f32.mrb[0].mxu0 }
  0xdd   :  { %v99_v20 = vpop.f32.mrb[1].mxu0  ;;  %v109_v23 = vmax.f32 %v517_v19, 0.0 }
  0xde   :  { %v108_v21 = vmax.f32 %v99_v20, 0.0 }
  0xe0   :  { %535 = vmatpush3.xpose.msk.msra.mxu0 %vm196_vm2, %v108_v21 }
  0xe1   :  { %539 = vmatprep.subr.mxu0 %v566_v14 }
 0x1af   :  { %v533_v22 = vpop.f32.mrb[2].mxu1 }
 0x1b0   :  { %v269_v24 = vpop.f32.mrb[3].mxu1 }
 0x1b1   :  { %537 = vmatmul.mubr.msk.f32.vlgmr.msra.gmra.mrb[2].mxu0 %vm196_vm2, %v269_v24 }
 0x1b2   :  { %540 = vmatpush3.xpose.msk.msra.mxu0 %vm196_vm2, %v109_v23  ;;  %541 = vmatprep.mubr.msk.f32.mxu0 %vm567_vm3, %v566_v14 }
 0x1b5   :  { %542 = vmatmul.mubr.msk.f32.vlgmr.msra.gmra.mrb[4].mxu0 %vm196_vm2, %v533_v22 }
 0x284   :  { %v352_v26 = vpop.f32.mrb[2].mxu0 }
 0x285   :  { %v353_v27 = vadd.f32 %v352_v26, %v278_v25  ;;  %v538_v28 = vpop.f32.mrb[3].mxu0 }
 0x287   :  { %v432_v30 = vsel %vm112_vm0, %v353_v27, -inf }
 0x288   :  { %433 = vmax.xlane.f32.xlu0 %v432_v30  ;;  %v428_v31 = vpop.f32.mrb[4].mxu0 }
 0x289   :  { %v429_v32 = vadd.f32 %v428_v31, %v279_v29  ;;  %v543_v33 = vpop.f32.mrb[5].mxu0 }
 0x28b   :  { %v435_v34 = vsel %vm112_vm0, %v429_v32, -inf }
 0x28c   :  { %436 = vmax.xlane.f32.xlu0 %v435_v34 }
 0x315   :  { %v434_v35 = vpop.xlane.xlu0 %433 }
 0x316   :  { %v438_v36 = vrot.slane %v434_v35, 4 }
 0x318   :  { %v439_v37 = vmax.f32 %v434_v35, %v438_v36 }
 0x319   :  { %v437_v38 = vpop.xlane.xlu0 %436 }
 0x31a   :  { %v440_v39 = vrot.slane %v439_v37, 2  ;;  %v444_v40 = vrot.slane %v437_v38, 4 }
 0x31c   :  { %v441_v41 = vmax.f32 %v439_v37, %v440_v39  ;;  %v445_v42 = vmax.f32 %v437_v38, %v444_v40 }
 0x31e   :  { %v442_v43 = vrot.slane %v441_v41, 1  ;;  %v446_v44 = vrot.slane %v445_v42, 2 }
 0x320   :  { %v443_v45 = vmax.f32 %v441_v41, %v442_v43  ;;  %v447_v46 = vmax.f32 %v445_v42, %v446_v44 }
 0x322   :  { %v450_v47 = vsub.f32 %v353_v27, %v443_v45  ;;  %v448_v48 = vrot.slane %v447_v46, 1 }
 0x324   :  { %v452_v49 = vmul.f32 1.442695, %v450_v47  ;;  %v449_v50 = vmax.f32 %v447_v46, %v448_v48 }
 0x326   :  { %558 = vpow2.f32 %v452_v49  ;;  %v451_v51 = vsub.f32 %v429_v32, %v449_v50 }
 0x328   :  { %v454_v52 = vmul.f32 1.442695, %v451_v51 }
 0x32a   :  { %560 = vpow2.f32 %v454_v52 }
 0x330   :  { %v559_v53 = vpop.eup %558 }
 0x331   :  { %v456_v54 = vsel %vm112_vm0, %v559_v53, 0.0 }
 0x332   :  { %457 = vadd.xlane.f32.xlu1 %v456_v54 }
 0x334   :  { %v561_v55 = vpop.eup %560 }
 0x335   :  { %v459_v56 = vsel %vm112_vm0, %v561_v55, 0.0 }
 0x336   :  { %460 = vadd.xlane.f32.xlu1 %v459_v56 }
 0x3bf   :  { %v458_v57 = vpop.xlane.xlu1 %457 }
 0x3c0   :  { %v462_v58 = vrot.slane %v458_v57, 4 }
 0x3c2   :  { %v463_v59 = vadd.f32 %v462_v58, %v458_v57 }
 0x3c3   :  { %v461_v60 = vpop.xlane.xlu1 %460 }
 0x3c4   :  { %v464_v61 = vrot.slane %v463_v59, 2  ;;  %v468_v62 = vrot.slane %v461_v60, 4 }
 0x3c6   :  { %v465_v63 = vadd.f32 %v464_v61, %v463_v59  ;;  %v469_v0 = vadd.f32 %v468_v62, %v461_v60 }
 0x3c8   :  { %v466_v1 = vrot.slane %v465_v63, 1  ;;  %v470_v2 = vrot.slane %v469_v0, 2 }
 0x3ca   :  { %v467_v3 = vadd.f32 %v466_v1, %v465_v63  ;;  %v471_v4 = vadd.f32 %v470_v2, %v469_v0 }
 0x3cc   :  { %562 = vrcp.f32 %v467_v3  ;;  %v472_v5 = vrot.slane %v471_v4, 1 }
 0x3ce   :  { %v473_v6 = vadd.f32 %v472_v5, %v471_v4 }
 0x3d0   :  { %564 = vrcp.f32 %v473_v6 }
 0x3d6   :  { %v563_v7 = vpop.eup %562 }
 0x3d7   :  { %v475_v8 = vmul.f32 %v563_v7, %v559_v53 }
 0x3d9   :  { %478 = vst.msk [vmem:[%s658_s4] sm:$0xff] %vm112_vm0, %v475_v8 }
 0x3da   :  { %v565_v9 = vpop.eup %564 }
 0x3db   :  { %v477_v10 = vmul.f32 %v565_v9, %v561_v55 }
 0x3dd   :  { %479 = vst.msk [vmem:[%s658_s4 + $0x8] sm:$0xff] %vm112_vm0, %v477_v10 }

</bundles_post_ra>
